<compile_context>
chip_gen: v5e
topology: v5e:2x2
jax: 0.10.0
libtpu: 0.0.40
codegen_flags: <defaults>
</compile_context>

<pallas_src>
import functools
import numpy as np
import jax
import jax.numpy as jnp
from jax.experimental import pallas as pl
from jax.experimental.pallas import tpu as pltpu


def _round_up(x, m):
    return ((x + m - 1) // m) * m


# ------------------------- deterministic parameter setup --------------------

def _hann_periodic(m):
    n = np.arange(m)
    return 0.5 - 0.5 * np.cos(2.0 * np.pi * n / m)


def window_sumsquare_np(n_frames, hop_length, win_length, n_fft):
    n = n_fft + hop_length * (n_frames - 1)
    x = np.zeros(n, dtype=np.float32)
    win_sq = _hann_periodic(win_length).astype(np.float32) ** 2
    # librosa pad_center is a no-op when win_length == n_fft
    for i in range(n_frames):
        sample = i * hop_length
        x[sample:min(n, sample + n_fft)] += win_sq[:max(0, min(n_fft, n - sample))]
    return x


def make_stft_params(filter_length=16, hop_length=4, win_length=16):
    cutoff = filter_length // 2 + 1
    scale = filter_length / hop_length
    fourier_basis = np.fft.fft(np.eye(filter_length))
    fb = np.vstack([np.real(fourier_basis[:cutoff, :]),
                    np.imag(fourier_basis[:cutoff, :])])            # (2C, N)
    inv = np.linalg.pinv(scale * fb).T                              # (2C, N)
    fft_window = _hann_periodic(win_length)                         # pad_center no-op
    forward_basis = (fb * fft_window[None, :]).astype(np.float32)   # (2C, N)
    inverse_basis = (inv * fft_window[None, :]).astype(np.float32)  # (2C, N)
    return dict(filter_length=filter_length, hop_length=hop_length,
                win_length=win_length, cutoff=cutoff,
                forward_basis=forward_basis, inverse_basis=inverse_basis)


# ------------------------------- Pallas kernel -------------------------------

def _stft_fused_kernel(frames_ref, basis_ref, invb_ref, mult_ref,
                       spec_ref, mag_ref, rec_ref,
                       *, n_frames, hop, n_fft):
    # frames_ref: (1, F_pad, N_pad)   lane-dense im2col frames of the padded signal
    # basis_ref : (N_pad, C2p)        forward basis^T  (real cols | imag cols, each 128-aligned)
    # invb_ref  : (C2p, N_pad)        inverse basis    (real rows | imag rows, each 128-aligned)
    # mult_ref  : (1, L_pad)          (1/window_sumsquare) * filter_length/hop, 0 in padding
    # spec_ref  : (1, F_pad, C2p)     real||imag spectrum output
    # mag_ref   : (1, F_pad, Ch)      magnitude output
    # rec_ref   : (1, 1, L_pad)       overlap-added reconstruction (untrimmed)
    c2p = spec_ref.shape[2]
    ch = c2p // 2

    # ---- forward transform: ONE K=N_pad MXU matmul, lane-dense operands.
    spec = jnp.dot(frames_ref[0], basis_ref[...],
                   preferred_element_type=jnp.float32)            # (F_pad, C2p) f32
    spec_ref[0] = spec                                            # single lane-dense store

    # ---- magnitude fused in-kernel (sqrt -> EUP slot); halves are 128-aligned lane slices.
    real = spec[:, :ch]
    imag = spec[:, ch:]
    mag_ref[0] = jnp.sqrt(real * real + imag * imag)

    # ---- inverse transform: ONE full-width matmul.  real/imag are fed back directly
    # (magnitude*cos(atan2(imag,real)) == real, etc.), so no atan2/cos/sin round trip.
    contrib = jnp.dot(spec.astype(invb_ref.dtype), invb_ref[...],
                      preferred_element_type=jnp.float32)          # (F_pad, N_pad) f32

    # ---- overlap-add directly into the VMEM-resident output block (no scratch).
    rec_ref[...] = jnp.zeros_like(rec_ref)
    for f in range(n_frames):                                      # static unroll (small F)
        sl = pl.ds(f * hop, n_fft)
        rec_ref[0, :, sl] = rec_ref[0, :, sl] + contrib[f:f + 1, :n_fft]
    # TODO(synk): for long signals add a frames-tile grid axis (with an R-block halo)
    # and vectorize the shifted adds (pltpu.roll stride trick) instead of this unroll.

    # ---- fused window_sumsquare correction + filter_length/hop scaling, in place.
    rec_ref[0] = rec_ref[0] * mult_ref[...]


# ------------------------------- wrapper --------------------------------------

def stft_forward(x, params, *, matmul_dtype=jnp.float32, return_phase=False):
    N = params['filter_length']
    hop = params['hop_length']
    cutoff = params['cutoff']
    B, num_samples = x.shape
    pad = N // 2
    assert num_samples > pad, "reflect padding requires num_samples > filter_length//2"

    # reflect padding (same semantics as F.pad(..., mode='reflect'))
    xp = jnp.pad(x, ((0, 0), (pad, pad)), mode='reflect')
    padded_len = num_samples + 2 * pad
    n_frames = (padded_len - N) // hop + 1          # conv1d stride semantics
    full_len = (n_frames - 1) * hop + N             # conv_transpose1d output length

    # lane/sublane-dense padded sizes
    F_pad = _round_up(n_frames, 8)
    N_pad = _round_up(N, 128)
    Ch = _round_up(cutoff, 128)                     # each of real/imag half 128-aligned
    C2p = 2 * Ch
    L_pad = _round_up(full_len, 128)

    # wrapper-side im2col: frames[b, f, t] = xp[b, f*hop + t]  (lane-dense, zero-padded)
    idx = jnp.arange(n_frames)[:, None] * hop + jnp.arange(N)[None, :]
    frames = jnp.take(xp, idx, axis=1)                              # (B, F, N)
    frames = jnp.pad(frames, ((0, 0), (0, F_pad - n_frames), (0, N_pad - N)))
    frames = frames.astype(matmul_dtype)

    # combined, 128-aligned forward/inverse bases (real block | imag block)
    fb = params['forward_basis']                    # (2C, N) f32, windowed
    ib = params['inverse_basis']                    # (2C, N) f32, windowed
    basis_c = np.zeros((N_pad, C2p), np.float32)
    basis_c[:N, :cutoff] = fb[:cutoff, :].T
    basis_c[:N, Ch:Ch + cutoff] = fb[cutoff:, :].T
    invb_c = np.zeros((C2p, N_pad), np.float32)
    invb_c[:cutoff, :N] = ib[:cutoff, :]
    invb_c[Ch:Ch + cutoff, :N] = ib[cutoff:, :]
    basis_c = jnp.asarray(basis_c, dtype=matmul_dtype)
    invb_c = jnp.asarray(invb_c, dtype=matmul_dtype)

    # window_sumsquare correction fused with the filter_length/hop scale (one multiplier)
    wsum = window_sumsquare_np(n_frames, hop, params['win_length'], N)
    tiny = np.finfo(np.float32).tiny
    mult = np.zeros((1, L_pad), np.float32)
    mult[0, :full_len] = np.where(wsum > tiny, 1.0 / wsum, 1.0) * (float(N) / hop)
    mult = jnp.asarray(mult)

    kernel = functools.partial(_stft_fused_kernel,
                               n_frames=n_frames, hop=hop, n_fft=N)

    # TODO(synk): at real sizes (N=800, long audio) single-buffer the grid-constant
    # bases (pipeline_mode=pl.Buffered(1) or a one-shot pl.ANY DMA into persistent
    # VMEM) and tile frames on a second grid axis so VMEM stays within v7x's 64 MiB.
    spec, mag, rec = pl.pallas_call(
        kernel,
        grid=(B,),
        in_specs=[
            pl.BlockSpec((1, F_pad, N_pad), lambda b: (b, 0, 0)),
            pl.BlockSpec((N_pad, C2p), lambda b: (0, 0)),
            pl.BlockSpec((C2p, N_pad), lambda b: (0, 0)),
            pl.BlockSpec((1, L_pad), lambda b: (0, 0)),
        ],
        out_specs=(
            pl.BlockSpec((1, F_pad, C2p), lambda b: (b, 0, 0)),
            pl.BlockSpec((1, F_pad, Ch), lambda b: (b, 0, 0)),
            pl.BlockSpec((1, 1, L_pad), lambda b: (b, 0, 0)),
        ),
        out_shape=(
            jax.ShapeDtypeStruct((B, F_pad, C2p), jnp.float32),
            jax.ShapeDtypeStruct((B, F_pad, Ch), jnp.float32),
            jax.ShapeDtypeStruct((B, 1, L_pad), jnp.float32),
        ),
        compiler_params=pltpu.CompilerParams(dimension_semantics=("parallel",)),
    )(frames, basis_c, invb_c, mult)

    # torch layout: magnitude/phase are (B, cutoff, n_frames)
    magnitude = jnp.transpose(mag[:, :n_frames, :cutoff], (0, 2, 1))
    # trim filter_length//2 samples from each side, as in the PyTorch module
    recon = rec[:, 0, pad:full_len - pad][:, None, :]
    if return_phase:
        real = spec[:, :n_frames, :cutoff]
        imag = spec[:, :n_frames, Ch:Ch + cutoff]
        phase = jnp.transpose(jnp.arctan2(imag, real), (0, 2, 1))
    else:
        phase = None   # arctan2 gated off; inverse path never needs it
    return recon, magnitude, phase


# ------------------------- pure numpy reference -------------------------------

def stft_forward_ref(x, params):
    N = params['filter_length']; hop = params['hop_length']; cutoff = params['cutoff']
    B, num_samples = x.shape
    pad = N // 2
    xp = np.pad(x, ((0, 0), (pad, pad)), mode='reflect')
    n_frames = (xp.shape[1] - N) // hop + 1
    idx = np.arange(n_frames)[:, None] * hop + np.arange(N)[None, :]
    frames = xp[:, idx]
    ft = frames @ params['forward_basis'].T
    real, imag = ft[..., :cutoff], ft[..., cutoff:]
    mag = np.sqrt(real ** 2 + imag ** 2)
    phase = np.arctan2(imag, real)
    rec_r = mag * np.cos(phase)
    rec_i = mag * np.sin(phase)
    contrib = rec_r @ params['inverse_basis'][:cutoff] + rec_i @ params['inverse_basis'][cutoff:]
    L = (n_frames - 1) * hop + N
    out = np.zeros((B, L), np.float32)
    for f in range(n_frames):
        out[:, f * hop:f * hop + N] += contrib[:, f, :]
    wsum = window_sumsquare_np(n_frames, hop, params['win_length'], N)
    nz = wsum > np.finfo(np.float32).tiny
    out[:, nz] /= wsum[nz]
    out *= float(N) / hop
    return out[:, None, pad:L - pad], np.transpose(mag, (0, 2, 1)).astype(np.float32)


if __name__ == "__main__":
    params = make_stft_params(filter_length=16, hop_length=4, win_length=16)
    key = jax.random.PRNGKey(0)
    x = jax.random.normal(key, (2, 32), dtype=jnp.float32)

    recon, mag, _ = stft_forward(x, params)          # phase computed only on demand
    recon = jax.block_until_ready(recon)
    mag = jax.block_until_ready(mag)

    assert recon.shape == (2, 1, 32) and recon.dtype == jnp.float32
    assert mag.shape == (2, 9, 9)

    ref_rec, ref_mag = stft_forward_ref(np.asarray(x), params)
    err_rec = float(np.max(np.abs(np.asarray(recon) - ref_rec)))
    err_mag = float(np.max(np.abs(np.asarray(mag) - ref_mag)))
    assert err_rec < 1e-2, f"recon max abs error {err_rec}"
    assert err_mag < 1e-2, f"magnitude max abs error {err_mag}"
    print("KERNEL_OK")
</pallas_src>

<mosaic_0001>
module attributes {stable_mosaic.version = 11 : i64} {
  func.func @_stft_fused_kernel(%arg0: i32, %arg1: memref<1x16x128xf32, #tpu.memory_space<vmem>>, %arg2: memref<128x256xf32, #tpu.memory_space<vmem>>, %arg3: memref<256x128xf32, #tpu.memory_space<vmem>>, %arg4: memref<1x128xf32, #tpu.memory_space<vmem>>, %arg5: memref<1x16x256xf32, #tpu.memory_space<vmem>>, %arg6: memref<1x16x128xf32, #tpu.memory_space<vmem>>, %arg7: memref<1x1x128xf32, #tpu.memory_space<vmem>>) attributes {dimension_semantics = [#tpu.dimension_semantics<parallel>], iteration_bounds = array<i64: 2>, scalar_prefetch = 0 : i64, scratch_operands = 0 : i64, tpu.core_type = #tpu.core_type<tc>, window_params = [{transform_indices = @transform_0, window_bounds = array<i64: 1, 16, 128>}, {pipeline_mode = #tpu.pipeline_mode<synchronous>, transform_indices = @transform_1, window_bounds = array<i64: 128, 256>}, {pipeline_mode = #tpu.pipeline_mode<synchronous>, transform_indices = @transform_2, window_bounds = array<i64: 256, 128>}, {pipeline_mode = #tpu.pipeline_mode<synchronous>, transform_indices = @transform_3, window_bounds = array<i64: 1, 128>}, {transform_indices = @transform_4, window_bounds = array<i64: 1, 16, 256>}, {transform_indices = @transform_5, window_bounds = array<i64: 1, 16, 128>}, {transform_indices = @transform_6, window_bounds = array<i64: 1, 1, 128>}]} {
    %c0 = arith.constant 0 : index
    %c0_0 = arith.constant 0 : index
    %c0_1 = arith.constant 0 : index
    %0 = vector.load %arg1[%c0, %c0_0, %c0_1] : memref<1x16x128xf32, #tpu.memory_space<vmem>>, vector<1x16x128xf32>
    %1 = vector.shape_cast %0 : vector<1x16x128xf32> to vector<16x128xf32>
    %c0_2 = arith.constant 0 : index
    %c0_3 = arith.constant 0 : index
    %2 = vector.load %arg2[%c0_2, %c0_3] : memref<128x256xf32, #tpu.memory_space<vmem>>, vector<128x256xf32>
    %cst = arith.constant dense<0.000000e+00> : vector<16x256xf32>
    %3 = tpu.matmul %1, %2, %cst {dimension_numbers = #tpu.dot_dimension_numbers<[1], [0], [0], [1], [0, 0, 1, 1], [], []>} : vector<16x128xf32>, vector<128x256xf32>, vector<16x256xf32> -> vector<16x256xf32>
    %c0_4 = arith.constant 0 : index
    %c0_5 = arith.constant 0 : index
    %c0_6 = arith.constant 0 : index
    %4 = vector.load %arg5[%c0_4, %c0_5, %c0_6] : memref<1x16x256xf32, #tpu.memory_space<vmem>>, vector<1x16x256xf32>
    %5 = vector.shape_cast %4 : vector<1x16x256xf32> to vector<16x256xf32>
    %6 = vector.shape_cast %3 : vector<16x256xf32> to vector<1x16x256xf32>
    tpu.vector_store %arg5[%c0_4, %c0_5, %c0_6], %6 {strides = array<i32>} : memref<1x16x256xf32, #tpu.memory_space<vmem>>, vector<1x16x256xf32>,
    %7 = vector.extract_strided_slice %3 {offsets = [0, 0], sizes = [16, 128], strides = [1, 1]} : vector<16x256xf32> to vector<16x128xf32>
    %8 = vector.extract_strided_slice %3 {offsets = [0, 128], sizes = [16, 128], strides = [1, 1]} : vector<16x256xf32> to vector<16x128xf32>
    %9 = arith.mulf %7, %7 : vector<16x128xf32>
    %10 = arith.mulf %8, %8 : vector<16x128xf32>
    %11 = arith.addf %9, %10 : vector<16x128xf32>
    %12 = math.sqrt %11 : vector<16x128xf32>
    %c0_7 = arith.constant 0 : index
    %c0_8 = arith.constant 0 : index
    %c0_9 = arith.constant 0 : index
    %13 = vector.load %arg6[%c0_7, %c0_8, %c0_9] : memref<1x16x128xf32, #tpu.memory_space<vmem>>, vector<1x16x128xf32>
    %14 = vector.shape_cast %13 : vector<1x16x128xf32> to vector<16x128xf32>
    %15 = vector.shape_cast %12 : vector<16x128xf32> to vector<1x16x128xf32>
    tpu.vector_store %arg6[%c0_7, %c0_8, %c0_9], %15 {strides = array<i32>} : memref<1x16x128xf32, #tpu.memory_space<vmem>>, vector<1x16x128xf32>,
    %c0_10 = arith.constant 0 : index
    %c0_11 = arith.constant 0 : index
    %16 = vector.load %arg3[%c0_10, %c0_11] : memref<256x128xf32, #tpu.memory_space<vmem>>, vector<256x128xf32>
    %cst_12 = arith.constant dense<0.000000e+00> : vector<16x128xf32>
    %17 = tpu.matmul %3, %16, %cst_12 {dimension_numbers = #tpu.dot_dimension_numbers<[1], [0], [0], [1], [0, 0, 1, 1], [], []>} : vector<16x256xf32>, vector<256x128xf32>, vector<16x128xf32> -> vector<16x128xf32>
    %cst_13 = arith.constant 0.000000e+00 : f32
    %18 = vector.broadcast %cst_13 : f32 to vector<1x1x128xf32>
    %c0_14 = arith.constant 0 : index
    %c0_15 = arith.constant 0 : index
    %c0_16 = arith.constant 0 : index
    %19 = vector.load %arg7[%c0_14, %c0_15, %c0_16] : memref<1x1x128xf32, #tpu.memory_space<vmem>>, vector<1x1x128xf32>
    tpu.vector_store %arg7[%c0_14, %c0_15, %c0_16], %18 {strides = array<i32>} : memref<1x1x128xf32, #tpu.memory_space<vmem>>, vector<1x1x128xf32>,
    %c0_17 = arith.constant 0 : index
    %c0_18 = arith.constant 0 : index
    %c0_19 = arith.constant 0 : index
    %20 = vector.load %arg7[%c0_17, %c0_18, %c0_19] : memref<1x1x128xf32, #tpu.memory_space<vmem>>, vector<1x1x16xf32>
    %21 = vector.shape_cast %20 : vector<1x1x16xf32> to vector<1x16xf32>
    %22 = vector.extract_strided_slice %17 {offsets = [0, 0], sizes = [1, 16], strides = [1, 1]} : vector<16x128xf32> to vector<1x16xf32>
    %23 = arith.addf %21, %22 : vector<1x16xf32>
    %c0_20 = arith.constant 0 : index
    %c0_21 = arith.constant 0 : index
    %c0_22 = arith.constant 0 : index
    %24 = vector.load %arg7[%c0_20, %c0_21, %c0_22] : memref<1x1x128xf32, #tpu.memory_space<vmem>>, vector<1x1x16xf32>
    %25 = vector.shape_cast %24 : vector<1x1x16xf32> to vector<1x16xf32>
    %26 = vector.shape_cast %23 : vector<1x16xf32> to vector<1x1x16xf32>
    tpu.vector_store %arg7[%c0_20, %c0_21, %c0_22], %26 {strides = array<i32>} : memref<1x1x128xf32, #tpu.memory_space<vmem>>, vector<1x1x16xf32>,
    %c0_23 = arith.constant 0 : index
    %c0_24 = arith.constant 0 : index
    %c4 = arith.constant 4 : index
    %27 = vector.load %arg7[%c0_23, %c0_24, %c4] : memref<1x1x128xf32, #tpu.memory_space<vmem>>, vector<1x1x16xf32>
    %28 = vector.shape_cast %27 : vector<1x1x16xf32> to vector<1x16xf32>
    %29 = vector.extract_strided_slice %17 {offsets = [1, 0], sizes = [1, 16], strides = [1, 1]} : vector<16x128xf32> to vector<1x16xf32>
    %30 = arith.addf %28, %29 : vector<1x16xf32>
    %c0_25 = arith.constant 0 : index
    %c0_26 = arith.constant 0 : index
    %c4_27 = arith.constant 4 : index
    %31 = vector.load %arg7[%c0_25, %c0_26, %c4_27] : memref<1x1x128xf32, #tpu.memory_space<vmem>>, vector<1x1x16xf32>
    %32 = vector.shape_cast %31 : vector<1x1x16xf32> to vector<1x16xf32>
    %33 = vector.shape_cast %30 : vector<1x16xf32> to vector<1x1x16xf32>
    tpu.vector_store %arg7[%c0_25, %c0_26, %c4_27], %33 {strides = array<i32>} : memref<1x1x128xf32, #tpu.memory_space<vmem>>, vector<1x1x16xf32>,
    %c0_28 = arith.constant 0 : index
    %c0_29 = arith.constant 0 : index
    %c8 = arith.constant 8 : index
    %34 = vector.load %arg7[%c0_28, %c0_29, %c8] : memref<1x1x128xf32, #tpu.memory_space<vmem>>, vector<1x1x16xf32>
    %35 = vector.shape_cast %34 : vector<1x1x16xf32> to vector<1x16xf32>
    %36 = vector.extract_strided_slice %17 {offsets = [2, 0], sizes = [1, 16], strides = [1, 1]} : vector<16x128xf32> to vector<1x16xf32>
    %37 = arith.addf %35, %36 : vector<1x16xf32>
    %c0_30 = arith.constant 0 : index
    %c0_31 = arith.constant 0 : index
    %c8_32 = arith.constant 8 : index
    %38 = vector.load %arg7[%c0_30, %c0_31, %c8_32] : memref<1x1x128xf32, #tpu.memory_space<vmem>>, vector<1x1x16xf32>
    %39 = vector.shape_cast %38 : vector<1x1x16xf32> to vector<1x16xf32>
    %40 = vector.shape_cast %37 : vector<1x16xf32> to vector<1x1x16xf32>
    tpu.vector_store %arg7[%c0_30, %c0_31, %c8_32], %40 {strides = array<i32>} : memref<1x1x128xf32, #tpu.memory_space<vmem>>, vector<1x1x16xf32>,
    %c0_33 = arith.constant 0 : index
    %c0_34 = arith.constant 0 : index
    %c12 = arith.constant 12 : index
    %41 = vector.load %arg7[%c0_33, %c0_34, %c12] : memref<1x1x128xf32, #tpu.memory_space<vmem>>, vector<1x1x16xf32>
    %42 = vector.shape_cast %41 : vector<1x1x16xf32> to vector<1x16xf32>
    %43 = vector.extract_strided_slice %17 {offsets = [3, 0], sizes = [1, 16], strides = [1, 1]} : vector<16x128xf32> to vector<1x16xf32>
    %44 = arith.addf %42, %43 : vector<1x16xf32>
    %c0_35 = arith.constant 0 : index
    %c0_36 = arith.constant 0 : index
    %c12_37 = arith.constant 12 : index
    %45 = vector.load %arg7[%c0_35, %c0_36, %c12_37] : memref<1x1x128xf32, #tpu.memory_space<vmem>>, vector<1x1x16xf32>
    %46 = vector.shape_cast %45 : vector<1x1x16xf32> to vector<1x16xf32>
    %47 = vector.shape_cast %44 : vector<1x16xf32> to vector<1x1x16xf32>
    tpu.vector_store %arg7[%c0_35, %c0_36, %c12_37], %47 {strides = array<i32>} : memref<1x1x128xf32, #tpu.memory_space<vmem>>, vector<1x1x16xf32>,
    %c0_38 = arith.constant 0 : index
    %c0_39 = arith.constant 0 : index
    %c16 = arith.constant 16 : index
    %48 = vector.load %arg7[%c0_38, %c0_39, %c16] : memref<1x1x128xf32, #tpu.memory_space<vmem>>, vector<1x1x16xf32>
    %49 = vector.shape_cast %48 : vector<1x1x16xf32> to vector<1x16xf32>
    %50 = vector.extract_strided_slice %17 {offsets = [4, 0], sizes = [1, 16], strides = [1, 1]} : vector<16x128xf32> to vector<1x16xf32>
    %51 = arith.addf %49, %50 : vector<1x16xf32>
    %c0_40 = arith.constant 0 : index
    %c0_41 = arith.constant 0 : index
    %c16_42 = arith.constant 16 : index
    %52 = vector.load %arg7[%c0_40, %c0_41, %c16_42] : memref<1x1x128xf32, #tpu.memory_space<vmem>>, vector<1x1x16xf32>
    %53 = vector.shape_cast %52 : vector<1x1x16xf32> to vector<1x16xf32>
    %54 = vector.shape_cast %51 : vector<1x16xf32> to vector<1x1x16xf32>
    tpu.vector_store %arg7[%c0_40, %c0_41, %c16_42], %54 {strides = array<i32>} : memref<1x1x128xf32, #tpu.memory_space<vmem>>, vector<1x1x16xf32>,
    %c0_43 = arith.constant 0 : index
    %c0_44 = arith.constant 0 : index
    %c20 = arith.constant 20 : index
    %55 = vector.load %arg7[%c0_43, %c0_44, %c20] : memref<1x1x128xf32, #tpu.memory_space<vmem>>, vector<1x1x16xf32>
    %56 = vector.shape_cast %55 : vector<1x1x16xf32> to vector<1x16xf32>
    %57 = vector.extract_strided_slice %17 {offsets = [5, 0], sizes = [1, 16], strides = [1, 1]} : vector<16x128xf32> to vector<1x16xf32>
    %58 = arith.addf %56, %57 : vector<1x16xf32>
    %c0_45 = arith.constant 0 : index
    %c0_46 = arith.constant 0 : index
    %c20_47 = arith.constant 20 : index
    %59 = vector.load %arg7[%c0_45, %c0_46, %c20_47] : memref<1x1x128xf32, #tpu.memory_space<vmem>>, vector<1x1x16xf32>
    %60 = vector.shape_cast %59 : vector<1x1x16xf32> to vector<1x16xf32>
    %61 = vector.shape_cast %58 : vector<1x16xf32> to vector<1x1x16xf32>
    tpu.vector_store %arg7[%c0_45, %c0_46, %c20_47], %61 {strides = array<i32>} : memref<1x1x128xf32, #tpu.memory_space<vmem>>, vector<1x1x16xf32>,
    %c0_48 = arith.constant 0 : index
    %c0_49 = arith.constant 0 : index
    %c24 = arith.constant 24 : index
    %62 = vector.load %arg7[%c0_48, %c0_49, %c24] : memref<1x1x128xf32, #tpu.memory_space<vmem>>, vector<1x1x16xf32>
    %63 = vector.shape_cast %62 : vector<1x1x16xf32> to vector<1x16xf32>
    %64 = vector.extract_strided_slice %17 {offsets = [6, 0], sizes = [1, 16], strides = [1, 1]} : vector<16x128xf32> to vector<1x16xf32>
    %65 = arith.addf %63, %64 : vector<1x16xf32>
    %c0_50 = arith.constant 0 : index
    %c0_51 = arith.constant 0 : index
    %c24_52 = arith.constant 24 : index
    %66 = vector.load %arg7[%c0_50, %c0_51, %c24_52] : memref<1x1x128xf32, #tpu.memory_space<vmem>>, vector<1x1x16xf32>
    %67 = vector.shape_cast %66 : vector<1x1x16xf32> to vector<1x16xf32>
    %68 = vector.shape_cast %65 : vector<1x16xf32> to vector<1x1x16xf32>
    tpu.vector_store %arg7[%c0_50, %c0_51, %c24_52], %68 {strides = array<i32>} : memref<1x1x128xf32, #tpu.memory_space<vmem>>, vector<1x1x16xf32>,
    %c0_53 = arith.constant 0 : index
    %c0_54 = arith.constant 0 : index
    %c28 = arith.constant 28 : index
    %69 = vector.load %arg7[%c0_53, %c0_54, %c28] : memref<1x1x128xf32, #tpu.memory_space<vmem>>, vector<1x1x16xf32>
    %70 = vector.shape_cast %69 : vector<1x1x16xf32> to vector<1x16xf32>
    %71 = vector.extract_strided_slice %17 {offsets = [7, 0], sizes = [1, 16], strides = [1, 1]} : vector<16x128xf32> to vector<1x16xf32>
    %72 = arith.addf %70, %71 : vector<1x16xf32>
    %c0_55 = arith.constant 0 : index
    %c0_56 = arith.constant 0 : index
    %c28_57 = arith.constant 28 : index
    %73 = vector.load %arg7[%c0_55, %c0_56, %c28_57] : memref<1x1x128xf32, #tpu.memory_space<vmem>>, vector<1x1x16xf32>
    %74 = vector.shape_cast %73 : vector<1x1x16xf32> to vector<1x16xf32>
    %75 = vector.shape_cast %72 : vector<1x16xf32> to vector<1x1x16xf32>
    tpu.vector_store %arg7[%c0_55, %c0_56, %c28_57], %75 {strides = array<i32>} : memref<1x1x128xf32, #tpu.memory_space<vmem>>, vector<1x1x16xf32>,
    %c0_58 = arith.constant 0 : index
    %c0_59 = arith.constant 0 : index
    %c32 = arith.constant 32 : index
    %76 = vector.load %arg7[%c0_58, %c0_59, %c32] : memref<1x1x128xf32, #tpu.memory_space<vmem>>, vector<1x1x16xf32>
    %77 = vector.shape_cast %76 : vector<1x1x16xf32> to vector<1x16xf32>
    %78 = vector.extract_strided_slice %17 {offsets = [8, 0], sizes = [1, 16], strides = [1, 1]} : vector<16x128xf32> to vector<1x16xf32>
    %79 = arith.addf %77, %78 : vector<1x16xf32>
    %c0_60 = arith.constant 0 : index
    %c0_61 = arith.constant 0 : index
    %c32_62 = arith.constant 32 : index
    %80 = vector.load %arg7[%c0_60, %c0_61, %c32_62] : memref<1x1x128xf32, #tpu.memory_space<vmem>>, vector<1x1x16xf32>
    %81 = vector.shape_cast %80 : vector<1x1x16xf32> to vector<1x16xf32>
    %82 = vector.shape_cast %79 : vector<1x16xf32> to vector<1x1x16xf32>
    tpu.vector_store %arg7[%c0_60, %c0_61, %c32_62], %82 {strides = array<i32>} : memref<1x1x128xf32, #tpu.memory_space<vmem>>, vector<1x1x16xf32>,
    %c0_63 = arith.constant 0 : index
    %c0_64 = arith.constant 0 : index
    %c0_65 = arith.constant 0 : index
    %83 = vector.load %arg7[%c0_63, %c0_64, %c0_65] : memref<1x1x128xf32, #tpu.memory_space<vmem>>, vector<1x1x128xf32>
    %84 = vector.shape_cast %83 : vector<1x1x128xf32> to vector<1x128xf32>
    %c0_66 = arith.constant 0 : index
    %c0_67 = arith.constant 0 : index
    %85 = vector.load %arg4[%c0_66, %c0_67] : memref<1x128xf32, #tpu.memory_space<vmem>>, vector<1x128xf32>
    %86 = arith.mulf %84, %85 : vector<1x128xf32>
    %c0_68 = arith.constant 0 : index
    %c0_69 = arith.constant 0 : index
    %c0_70 = arith.constant 0 : index
    %87 = vector.load %arg7[%c0_68, %c0_69, %c0_70] : memref<1x1x128xf32, #tpu.memory_space<vmem>>, vector<1x1x128xf32>
    %88 = vector.shape_cast %87 : vector<1x1x128xf32> to vector<1x128xf32>
    %89 = vector.shape_cast %86 : vector<1x128xf32> to vector<1x1x128xf32>
    tpu.vector_store %arg7[%c0_68, %c0_69, %c0_70], %89 {strides = array<i32>} : memref<1x1x128xf32, #tpu.memory_space<vmem>>, vector<1x1x128xf32>,
    return
  }
  func.func @transform_0(%arg0: i32) -> (i32, i32, i32) {
    %c0_i32 = arith.constant 0 : i32
    %c0_i32_0 = arith.constant 0 : i32
    %c0_i32_1 = arith.constant 0 : i32
    return %arg0, %c0_i32, %c0_i32_0 : i32, i32, i32
  }
  func.func @transform_1(%arg0: i32) -> (i32, i32) {
    %c0_i32 = arith.constant 0 : i32
    %c0_i32_0 = arith.constant 0 : i32
    %c0_i32_1 = arith.constant 0 : i32
    return %c0_i32, %c0_i32_0 : i32, i32
  }
  func.func @transform_2(%arg0: i32) -> (i32, i32) {
    %c0_i32 = arith.constant 0 : i32
    %c0_i32_0 = arith.constant 0 : i32
    %c0_i32_1 = arith.constant 0 : i32
    return %c0_i32, %c0_i32_0 : i32, i32
  }
  func.func @transform_3(%arg0: i32) -> (i32, i32) {
    %c0_i32 = arith.constant 0 : i32
    %c0_i32_0 = arith.constant 0 : i32
    %c0_i32_1 = arith.constant 0 : i32
    return %c0_i32, %c0_i32_0 : i32, i32
  }
  func.func @transform_4(%arg0: i32) -> (i32, i32, i32) {
    %c0_i32 = arith.constant 0 : i32
    %c0_i32_0 = arith.constant 0 : i32
    %c0_i32_1 = arith.constant 0 : i32
    return %arg0, %c0_i32, %c0_i32_0 : i32, i32, i32
  }
  func.func @transform_5(%arg0: i32) -> (i32, i32, i32) {
    %c0_i32 = arith.constant 0 : i32
    %c0_i32_0 = arith.constant 0 : i32
    %c0_i32_1 = arith.constant 0 : i32
    return %arg0, %c0_i32, %c0_i32_0 : i32, i32, i32
  }
  func.func @transform_6(%arg0: i32) -> (i32, i32, i32) {
    %c0_i32 = arith.constant 0 : i32
    %c0_i32_0 = arith.constant 0 : i32
    %c0_i32_1 = arith.constant 0 : i32
    return %arg0, %c0_i32, %c0_i32_0 : i32, i32, i32
  }
}

</mosaic_0001>

<bundles_post_ra>
// kernel: tpu_custom_call.1
= control target key start
LH: loop header
LB: loop body
LE: loop exit
PB: predicated region body
PF: predicated region fallthrough
CT: control target
= control target key end

     0   :  { %s1444_s0 = inlined_call_operand.hbm [shape: f32[2,16,128], index: 0, kind: input, shape index: {}]   ;;  %s1445_s1 = inlined_call_operand.hbm [shape: f32[128,256], index: 1, kind: input, shape index: {}]   ;;  %s1446_s2 = inlined_call_operand.hbm [shape: f32[256,128], index: 2, kind: input, shape index: {}]   ;;  %s1447_s3 = inlined_call_operand.vmem [shape: f32[1,128], index: 3, kind: input, shape index: {}]   ;;  %s1448_s4 = inlined_call_operand.hbm [shape: f32[2,16,256], index: 4, kind: output, shape index: {0}]   ;;  %s1449_s5 = inlined_call_operand.hbm [shape: f32[2,16,128], index: 5, kind: output, shape index: {1}]   ;;  %s1450_s6 = inlined_call_operand.hbm [shape: f32[2,1,128], index: 6, kind: output, shape index: {2}]  }
   0x1   :  { %1456 = sst [smem:[#allocation16_spill]] %s1444_s0 }
   0x2   :  { %1457 = sst [smem:[#allocation17_spill]] %s1445_s1 }
   0x3   :  { %1458 = sst [smem:[#allocation18_spill]] %s1446_s2 }
   0x4   :  { %1459 = sst [smem:[#allocation19_spill]] %s1449_s5 }
   0x5   :  { %12 = vsyncpa [#allocation3], 0 }
   0x6   :  { %14 = vsyncpa [#allocation3 + $0x1], 0 }
   0x7   :  { %15 = vsyncpa [#allocation6], 0 }
   0x8   :  { %16 = vsyncpa [#allocation4], 0 }
   0x9   :  { %18 = vsyncpa [#allocation4 + $0x1], 0 }
   0xa   :  { %19 = vsyncpa [#allocation10], 0 }
   0xb   :  { %21 = vsyncpa [#allocation10 + $0x1], 0  ;;  %s1204_s21 = smov 0   ;;  %s1206_s22 = smov 0  }
   0xc   :  { %s1208_s23 = smov 0   ;;  %s1210_s24 = smov 0  }
   0xd LB: > { %s1225_s25 = sadd.s32 4294967295, %s1150_s24   ;;  %s1451_s26 = sadd.s32 4294967294, %s1150_s24   ;;  %s1150_s24 = sphi %s1210_s24, %s1478_s24   ;;  %s1146_s23 = sphi %s1208_s23, %s1477_s23   ;;  %s1142_s22 = sphi %s1206_s22, %s1476_s22   ;;  %s1138_s21 = sphi %s1204_s21, %s1475_s21  }
   0xe   : > { %p47_p0 = scmp.ne.s32.totalorder %s1142_s22, %s1138_s21  ;;  %p48_p1 = scmp.eq.s32.totalorder %s1225_s25, 0 }
   0xf   : > { %p134_p2 = scmp.eq.s32.totalorder %s1225_s25, 1  ;;  %p140_p3 = scmp.eq.s32.totalorder %s1451_s26, 1 }
  0x10   : > { %p1236_p4 = por %p48_p1, %p47_p0  ;;  %p810_p5 = scmp.ge.s32.totalorder %s1150_s24, 1 }
  0x11   : > { %p1241_p6 = por %p140_p3, %p47_p0  ;;  %p199_p7 = scmp.lt.s32.totalorder %s1150_s24, 3 }
  0x12   : > { %s1462_s1 = sld [smem:[#allocation17_spill]]  ;;  %s1152_s9 = smov [#allocation5]  }
  0x13   : > { %p1249_p8 = pnand %p810_p5, %p199_p7  ;;  %s212_s10 = sshll.u32 %s1152_s9, 4  ;;  %s213_s10 = int_to_ptr.vmem [resolvable:$true] %s212_s10 }
  0x14   : > { %s1464_s2 = sld [smem:[#allocation18_spill]]  ;;  %s1153_s14 = smov 256  }
  0x15   : > { %p850_p9 = pneg %p1249_p8  ;;  %s1154_s15 = smov 16  }
  0x16   : > { %s1155_s16 = smov [#allocation7]   ;;  %s1452_s18 = smov 128  }
  0x17   : > { %p851_p10 = pnand %p850_p9, %p48_p1  ;;  %s226_s17 = sshll.u32 %s1155_s16, 4  ;;  %s227_s17 = int_to_ptr.vmem [resolvable:$true] %s226_s17 }
  0x18   : > { %s210_s7 = sshll.u32 %s1462_s1, 4  ;;  %s1453_s19 = smov 8   ;;  %s211_s7 = int_to_ptr.hbm [resolvable:$true] %s210_s7 }
  0x19   : > { %853 = dma.hbm_to_vmem [thread:$0]  (!%p851_p10), %s211_s7, 4096, %s213_s10, [#allocation6], %s1153_s14, %s1153_s14, %s1154_s15  }
  0x1a   : > { %s224_s13 = sshll.u32 %s1464_s2, 4  ;;  %s1265_s20 = sadd.s32 1, %s1150_s24   ;;  %s225_s13 = int_to_ptr.hbm [resolvable:$true] %s224_s13 }
  0x1b   : > { %856 = dma.hbm_to_vmem [thread:$0]  (!%p851_p10), %s225_s13, 4096, %s227_s17, [#allocation6], %s1452_s18, %s1452_s18, %s1453_s19  }
  0x1c   : > { %s31_s29 = ssub.s32 %s1150_s24, %s1265_s20  ;;  %s34_s30 = sadd.s32 1, %s1146_s23 }
  0x1d   : > { %p32_p12 = scmp.eq.s32.totalorder %s31_s29, 0  ;;  %p41_p13 = scmp.ne.s32.totalorder %s1146_s23, %s1142_s22 }
  0x1e   : > { %p42_p0 = scmp.eq.s32.totalorder %s1150_s24, 0  ;;  %p873_p7 = scmp.lt.s32.totalorder %s1150_s24, 2 }
  0x1f   : > { %s1274_s7 = scalar_select %p32_p12, %s1146_s23, %s34_s30  }
  0x20   : > { %p43_p3 = por %p42_p0, %p41_p13  ;;  %p1278_p5 = por %p134_p2, %p41_p13 }
  0x21   : > { %s243_s10 = sand.u32 1, %s1146_s23   ;;  %s831_s12 = sshll.u32 %s1150_s24, 4 }
  0x22   : > { %s814_s11 = sshll.u32 %s243_s10, 4  ;;  %s1466_s0 = sld [smem:[#allocation16_spill]] }
  0x23   : > { %s247_s16 = scalar_lea.vmem [#allocation2], %s814_s11  ;;  %p1288_p9 = pnand %p873_p7, %p43_p3 }
  0x24   : > { %s255_s17 = sshll.u32 %s247_s16, 4  ;;  %s244_s26 = scalar_lea.sflag [#allocation3], %s243_s10  ;;  %s256_s17 = int_to_ptr.vmem [resolvable:$true] %s255_s17 }
  0x25   : > { %p994_p10 = pneg %p1288_p9 }
  0x28   : > { %s252_s15 = scalar_lea.hbm %s1466_s0, %s831_s12  ;;  %s997_s13 = scalar_lea.hbm %s1466_s0, 32 }
  0x29   : > { %s253_s29 = sshll.u32 %s252_s15, 4  ;;  %s254_s29 = int_to_ptr.hbm [resolvable:$true] %s253_s29 }
  0x2a   : > { %s990_s18 = sshra.s32 %s254_s29, 4  ;;  %s991_s18 = int_to_ptr.hbm [resolvable:$true] %s990_s18 }
  0x2b   : > { %s992_s19 = scalar_lea.hbm %s991_s18, 16  ;;  %p998_p0 = scmp.lt.s32.totalorder %s991_s18, %s1466_s0 }
  0x2c   : > { %p993_p2 = scmp.ne.s32.totalorder %s991_s18, %s992_s19  ;;  %p999_p3 = scmp.lt.s32.totalorder %s997_s13, %s992_s19 }
  0x2e   : > { %p995_p12 = pnand %p994_p10, %p993_p2  ;;  %p1000_p7 = por %p999_p3, %p998_p0 }
  0x30   : > { %p996_p13 = pneg %p995_p12 }
  0x32   : > { %p1001_p11 = pnand %p1000_p7, %p996_p13 }
  0x34   : > { %1004 = shalt.err (!%p1001_p11)
}
  0x35   : > { %s1468_s10 = smov 8   ;;  %s1469_s16 = smov 128  }
  0x36   : > { %860 = dma.hbm_to_vmem [thread:$0]  (!%p1288_p9), %s254_s29, 256, %s256_s17, %s244_s26, %s1469_s16, %s1469_s16, %s1468_s10  }
  0x37   : > { %267 = sbr.rel (%p1249_p8) target bundleno = 563 (0x233), region = 36  ;;  %s1308_s12 = sand.u32 (!%p1249_p8), 1, %s1142_s22  }
  0x38   : > { %s818_s18 = sshll.u32 (!%p1249_p8), %s1308_s12, 4  ;;  %s270_s19 = scalar_lea.sflag (!%p1249_p8), [#allocation3], %s1308_s12 }
  0x39   : > { %s1314_s11 = scalar_lea.vmem (!%p1249_p8), [#allocation2], %s818_s18 }
  0x3c   : > { %1121 = dma.done.wait (%p1236_p4), %s270_s19, 256  }
  0x3d   : > { %1123 = vsyncadd (%p1236_p4), %s270_s19, 4294967040 }
  0x3e   : > { %1125 = dma.done.wait (%p48_p1), [#allocation6], 8192  }
  0x3f   : > { %1127 = vsyncadd (%p48_p1), [#allocation6], 4294959104  ;;  %v354_v0 = vld [vmem:[#allocation5 + $0xf0] sm:$0xff]  ;;  %v355_v1 = vld [vmem:[#allocation5 + $0xf8] sm:$0xff]  ;;  %s821_s26 = sshll.u32 %s1308_s12, 5  ;;  %s1335_s8 = scalar_lea.vmem [#allocation9], %s818_s18 }
  0x40   : > { %v352_v2 = vld [vmem:[#allocation5 + $0xe0] sm:$0xff]  ;;  %356 = vmatpush.msra.mxu0 %v354_v0  ;;  %379 = vmatpush.msra.mxu1 %v355_v1  ;;  %v353_v3 = vld [vmem:[#allocation5 + $0xe8] sm:$0xff]  ;;  %v350_v4 = vld [vmem:[#allocation5 + $0xd0] sm:$0xff]  ;;  %s1327_s27 = scalar_lea.vmem [#allocation8], %s821_s26  ;;  %s1340_s17 = scalar_lea.vmem [#allocation11], %s1308_s12  ;;  %vm519_vm4 = vcmask 122880  }
  0x41   : > { %v351_v5 = vld [vmem:[#allocation5 + $0xd8] sm:$0xff]  ;;  %v348_v6 = vld [vmem:[#allocation5 + $0xc0] sm:$0xff]  ;;  %v349_v7 = vld [vmem:[#allocation5 + $0xc8] sm:$0xff]  ;;  %s1159_s29 = smov 4   ;;  %s1455_s30 = smov 8  }
  0x42   : > { %357 = vmatpush.msra.mxu0 %v352_v2  ;;  %380 = vmatpush.msra.mxu1 %v353_v3  ;;  %v346_v8 = vld [vmem:[#allocation5 + $0xb0] sm:$0xff]  ;;  %v347_v9 = vld [vmem:[#allocation5 + $0xb8] sm:$0xff]  ;;  %v344_v10 = vld [vmem:[#allocation5 + $0xa0] sm:$0xff]  ;;  %s1161_s13 = smov 12   ;;  %s1454_s14 = smov 16  }
  0x43   : > { %v345_v11 = vld [vmem:[#allocation5 + $0xa8] sm:$0xff]  ;;  %v342_v12 = vld [vmem:[#allocation5 + $0x90] sm:$0xff]  ;;  %v343_v13 = vld [vmem:[#allocation5 + $0x98] sm:$0xff]  ;;  %s1163_s15 = smov 20   ;;  %s1164_s10 = smov 32  }
  0x44   : > { %358 = vmatpush.msra.mxu0 %v350_v4  ;;  %381 = vmatpush.msra.mxu1 %v351_v5  ;;  %v340_v14 = vld [vmem:[#allocation5 + $0x80] sm:$0xff]  ;;  %v453_v15 = vld [vmem:[#allocation7 + $0x78] sm:$0xff]  ;;  %v341_v17 = vld [vmem:[#allocation5 + $0x88] sm:$0xff]  ;;  %s1165_s16 = smov 24   ;;  %s1166_s18 = smov 28  }
  0x45   : > { %v469_v16 = vld [vmem:[#allocation7 + $0xf8] sm:$0xff]  ;;  %470 = vmatpush.msra.mxu2 %v453_v15  ;;  %v452_v18 = vld [vmem:[#allocation7 + $0x70] sm:$0xff]  ;;  %v451_v20 = vld [vmem:[#allocation7 + $0x68] sm:$0xff]  ;;  %s626_s19 = sshll.u32 %s1327_s27, 4  ;;  %s833_s26 = sshll.u32 %s1225_s25, 4  ;;  %s1354_s19 = int_to_ptr.vmem [resolvable:$true] %s626_s19 }
  0x46   : > { %359 = vmatpush.msra.mxu0 %v348_v6  ;;  %382 = vmatpush.msra.mxu1 %v349_v7  ;;  %v468_v19 = vld [vmem:[#allocation7 + $0xf0] sm:$0xff]  ;;  %v467_v21 = vld [vmem:[#allocation7 + $0xe8] sm:$0xff]  ;;  %v339_v23 = vld [vmem:[#allocation5 + $0x78] sm:$0xff]  ;;  %s1470_s5 = sld [smem:[#allocation19_spill]] }
  0x47   : > { %493 = vmatpush.msra.mxu3 %v469_v16  ;;  %v338_v22 = vld [vmem:[#allocation5 + $0x70] sm:$0xff]  ;;  %471 = vmatpush.msra.mxu2 %v452_v18  ;;  %v450_v24 = vld [vmem:[#allocation7 + $0x60] sm:$0xff]  ;;  %v337_v27 = vld [vmem:[#allocation5 + $0x68] sm:$0xff] }
  0x48   : > { %360 = vmatpush.msra.mxu0 %v346_v8  ;;  %383 = vmatpush.msra.mxu1 %v347_v9  ;;  %v466_v25 = vld [vmem:[#allocation7 + $0xe0] sm:$0xff]  ;;  %v449_v28 = vld [vmem:[#allocation7 + $0x58] sm:$0xff]  ;;  %v334_v30 = vld [vmem:[#allocation5 + $0x50] sm:$0xff] }
  0x49   : > { %494 = vmatpush.msra.mxu3 %v468_v19  ;;  %v336_v26 = vld [vmem:[#allocation5 + $0x60] sm:$0xff]  ;;  %472 = vmatpush.msra.mxu2 %v451_v20  ;;  %v465_v29 = vld [vmem:[#allocation7 + $0xd8] sm:$0xff]  ;;  %v448_v32 = vld [vmem:[#allocation7 + $0x50] sm:$0xff] }
  0x4a   : > { %361 = vmatpush.msra.mxu0 %v344_v10  ;;  %384 = vmatpush.msra.mxu1 %v345_v11  ;;  %v335_v31 = vld [vmem:[#allocation5 + $0x58] sm:$0xff]  ;;  %v464_v33 = vld [vmem:[#allocation7 + $0xd0] sm:$0xff]  ;;  %v332_v34 = vld [vmem:[#allocation5 + $0x40] sm:$0xff] }
  0x4b   : > { %495 = vmatpush.msra.mxu3 %v467_v21  ;;  %473 = vmatpush.msra.mxu2 %v450_v24  ;;  %v333_v35 = vld [vmem:[#allocation5 + $0x48] sm:$0xff]  ;;  %v330_v38 = vld [vmem:[#allocation5 + $0x30] sm:$0xff]  ;;  %v331_v39 = vld [vmem:[#allocation5 + $0x38] sm:$0xff] }
  0x4c   : > { %362 = vmatpush.msra.mxu0 %v342_v12  ;;  %385 = vmatpush.msra.mxu1 %v343_v13  ;;  %v447_v36 = vld [vmem:[#allocation7 + $0x48] sm:$0xff]  ;;  %v446_v40 = vld [vmem:[#allocation7 + $0x40] sm:$0xff]  ;;  %v445_v44 = vld [vmem:[#allocation7 + $0x38] sm:$0xff] }
  0x4d   : > { %496 = vmatpush.msra.mxu3 %v466_v25  ;;  %474 = vmatpush.msra.mxu2 %v449_v28  ;;  %v463_v37 = vld [vmem:[#allocation7 + $0xc8] sm:$0xff]  ;;  %v462_v41 = vld [vmem:[#allocation7 + $0xc0] sm:$0xff]  ;;  %v461_v45 = vld [vmem:[#allocation7 + $0xb8] sm:$0xff] }
  0x4e   : > { %363 = vmatpush.msra.mxu0 %v340_v14  ;;  %386 = vmatpush.msra.mxu1 %v341_v17  ;;  %v328_v42 = vld [vmem:[#allocation5 + $0x20] sm:$0xff]  ;;  %v329_v43 = vld [vmem:[#allocation5 + $0x28] sm:$0xff]  ;;  %v326_v46 = vld [vmem:[#allocation5 + $0x10] sm:$0xff] }
  0x4f   : > { %497 = vmatpush.msra.mxu3 %v465_v29  ;;  %475 = vmatpush.msra.mxu2 %v448_v32  ;;  %v327_v47 = vld [vmem:[#allocation5 + $0x18] sm:$0xff]  ;;  %v444_v48 = vld [vmem:[#allocation7 + $0x30] sm:$0xff]  ;;  %v324_v50 = vld [vmem:[#allocation5] sm:$0xff]  ;;  %v1158_v32 = vmov 0.0  }
  0x50   : > { %364 = vmatpush.msra.mxu0 %v338_v22  ;;  %387 = vmatpush.msra.mxu1 %v339_v23  ;;  %v460_v49 = vld [vmem:[#allocation7 + $0xb0] sm:$0xff]  ;;  %v325_v51 = vld [vmem:[#allocation5 + $0x8] sm:$0xff]  ;;  %v442_v55 = vld [vmem:[#allocation7 + $0x20] sm:$0xff]  ;;  %516 = vst [vmem:[%s1340_s17] sm:$0x1] %v1158_v32 }
  0x51   : > { %498 = vmatpush.msra.mxu3 %v464_v33  ;;  %476 = vmatpush.msra.mxu2 %v447_v36  ;;  %v322_v52 = vld [vmem:[%s1314_s11] sm:$0xff]  ;;  %v443_v53 = vld [vmem:[#allocation7 + $0x28] sm:$0xff]  ;;  %v441_v57 = vld [vmem:[#allocation7 + $0x18] sm:$0xff] }
  0x52   : > { %365 = vmatpush.msra.mxu0 %v336_v26  ;;  %388 = vmatpush.msra.mxu1 %v337_v27  ;;  %v459_v54 = vld [vmem:[#allocation7 + $0xa8] sm:$0xff]  ;;  %v458_v56 = vld [vmem:[#allocation7 + $0xa0] sm:$0xff]  ;;  %v457_v58 = vld [vmem:[#allocation7 + $0x98] sm:$0xff] }
  0x53   : > { %499 = vmatpush.msra.mxu3 %v463_v37  ;;  %477 = vmatpush.msra.mxu2 %v446_v40  ;;  %v440_v59 = vld [vmem:[#allocation7 + $0x10] sm:$0xff]  ;;  %v323_v61 = vld [vmem:[%s1314_s11 + $0x8] sm:$0xff]  ;;  %v438_v0 = vld [vmem:[#allocation7] sm:$0xff]  ;;  %s609_s11 = sand.u32 1, %s1225_s25  }
  0x54   : > { %366 = vmatpush.msra.mxu0 %v334_v30  ;;  %389 = vmatpush.msra.mxu1 %v335_v31  ;;  %v456_v60 = vld [vmem:[#allocation7 + $0x90] sm:$0xff]  ;;  %v439_v62 = vld [vmem:[#allocation7 + $0x8] sm:$0xff]  ;;  %v454_v1 = vld [vmem:[#allocation7 + $0x80] sm:$0xff] }
  0x55   : > { %500 = vmatpush.msra.mxu3 %v462_v41  ;;  %478 = vmatpush.msra.mxu2 %v445_v44  ;;  %v455_v63 = vld [vmem:[#allocation7 + $0x88] sm:$0xff] }
  0x56   : > { %367 = vmatpush.msra.mxu0 %v332_v34  ;;  %390 = vmatpush.msra.mxu1 %v333_v35 }
  0x57   : > { %501 = vmatpush.msra.mxu3 %v461_v45  ;;  %479 = vmatpush.msra.mxu2 %v444_v48  ;;  %v517_v35 = vld [vmem:[%s1340_s17] sm:$0x1] }
  0x58   : > { %368 = vmatpush.msra.mxu0 %v330_v38  ;;  %391 = vmatpush.msra.mxu1 %v331_v39 }
  0x59   : > { %502 = vmatpush.msra.mxu3 %v460_v49  ;;  %480 = vmatpush.msra.mxu2 %v443_v53 }
  0x5a   : > { %369 = vmatpush.msra.mxu0 %v328_v42  ;;  %392 = vmatpush.msra.mxu1 %v329_v43 }
  0x5b   : > { %503 = vmatpush.msra.mxu3 %v459_v54  ;;  %481 = vmatpush.msra.mxu2 %v442_v55 }
  0x5c   : > { %370 = vmatpush.msra.mxu0 %v326_v46  ;;  %393 = vmatpush.msra.mxu1 %v327_v47 }
  0x5d   : > { %504 = vmatpush.msra.mxu3 %v458_v56  ;;  %482 = vmatpush.msra.mxu2 %v441_v57 }
  0x5e   : > { %371 = vmatpush.msra.mxu0 %v324_v50  ;;  %394 = vmatpush.msra.mxu1 %v325_v51 }
  0x5f   : > { %372 = vmatmul.f32.vlgmr.msra.gmra.mxu0 %v322_v52  ;;  %395 = vmatmul.f32.vlgmr.msra.gmra.mxu1 %v322_v52 }
  0x60   : > { %505 = vmatpush.msra.mxu3 %v457_v58  ;;  %483 = vmatpush.msra.mxu2 %v440_v59 }
  0x62   : > { %506 = vmatpush.msra.mxu3 %v456_v60  ;;  %484 = vmatpush.msra.mxu2 %v439_v62 }
  0x64   : > { %507 = vmatpush.msra.mxu3 %v455_v63  ;;  %485 = vmatpush.msra.mxu2 %v438_v0 }
  0x66   : > { %508 = vmatpush.msra.mxu3 %v454_v1 }
  0x67   : > { %375 = vmatmul.f32.gmra.mxu0 %v323_v61  ;;  %398 = vmatmul.f32.gmra.mxu1 %v323_v61 }
  0xdc   : > { %v373_v2 = vpop.f32.mrf.mxu0  ;;  %v396_v3 = vpop.f32.mrf.mxu1 }
  0xdd   : > { %402 = vst [vmem:[%s1327_s27] sm:$0xff] %v373_v2  ;;  %v406_v4 = vmul.f32 %v373_v2, %v373_v2  ;;  %v408_v5 = vmul.f32 %v396_v3, %v396_v3  ;;  %486 = vmatmul.f32.vlgmr.msra.gmra.mxu2 %v373_v2  ;;  %509 = vmatmul.f32.vlgmr.msra.gmra.mxu3 %v396_v3 }
  0xde   : > { %403 = vst [vmem:[%s1327_s27 + $0x8] sm:$0xff] %v396_v3 }
  0xdf   : > { %v410_v6 = vadd.f32 %v408_v5, %v406_v4 }
  0xe1   : > { %926 = vrsqrt.f32 %v410_v6  ;;  %vm419_vm0 = vcmp.eq.f32.partialorder %v410_v6, inf  ;;  %v422_v18 = vand.u32 2147483648, %v410_v6  ;;  %vm421_vm1 = vcmp.eq.f32.partialorder %v410_v6, 0.0 }
  0xe4   : > { %v376_v7 = vpop.f32.mrf.mxu0  ;;  %v399_v8 = vpop.f32.mrf.mxu1 }
  0xe5   : > { %404 = vst [vmem:[%s1327_s27 + $0x10] sm:$0xff] %v376_v7  ;;  %489 = vmatmul.f32.gmra.mxu2 %v376_v7  ;;  %512 = vmatmul.f32.gmra.mxu3 %v399_v8  ;;  %v407_v15 = vmul.f32 %v376_v7, %v376_v7  ;;  %v409_v16 = vmul.f32 %v399_v8, %v399_v8 }
  0xe6   : > { %405 = vst [vmem:[%s1327_s27 + $0x18] sm:$0xff] %v399_v8 }
  0xe7   : > { %v927_v9 = vpop.eup %926  ;;  %v411_v20 = vadd.f32 %v409_v16, %v407_v15 }
  0xe8   : > { %v413_v10 = vmul.f32 %v927_v9, %v410_v6 }
  0xe9   : > { %928 = vrsqrt.f32 %v411_v20  ;;  %vm431_vm2 = vcmp.eq.f32.partialorder %v411_v20, inf  ;;  %v434_v29 = vand.u32 2147483648, %v411_v20  ;;  %vm433_vm3 = vcmp.eq.f32.partialorder %v411_v20, 0.0 }
  0xea   : > { %v414_v11 = vmul.f32 %v927_v9, %v413_v10 }
  0xec   : > { %v415_v12 = vmul.f32 0.5, %v414_v11 }
  0xee   : > { %v416_v13 = vsub.f32 1.5, %v415_v12 }
  0xef   : > { %v929_v22 = vpop.eup %928 }
  0xf0   : > { %v417_v14 = vmul.f32 %v927_v9, %v416_v13  ;;  %v425_v23 = vmul.f32 %v929_v22, %v411_v20 }
  0xf2   : > { %v418_v17 = vmul.f32 %v417_v14, %v410_v6  ;;  %v426_v24 = vmul.f32 %v929_v22, %v425_v23 }
  0xf4   : > { %v420_v19 = vsel %vm419_vm0, %v410_v6, %v418_v17  ;;  %v427_v25 = vmul.f32 0.5, %v426_v24 }
  0xf5   : > { %v423_v21 = vsel %vm421_vm1, %v422_v18, %v420_v19 }
  0xf6   : > { %436 = vst [vmem:[%s1335_s8] sm:$0xff] %v423_v21  ;;  %v428_v26 = vsub.f32 1.5, %v427_v25 }
  0xf8   : > { %v429_v27 = vmul.f32 %v929_v22, %v428_v26 }
  0xfa   : > { %v430_v28 = vmul.f32 %v429_v27, %v411_v20 }
  0xfc   : > { %v432_v30 = vsel %vm431_vm2, %v411_v20, %v430_v28 }
  0xfd   : > { %v435_v31 = vsel %vm433_vm3, %v434_v29, %v432_v30 }
  0xfe   : > { %437 = vst [vmem:[%s1335_s8 + $0x8] sm:$0xff] %v435_v31 }
 0x160   : > { %v487_v33 = vpop.f32.mrf.mxu2  ;;  %v510_v34 = vpop.f32.mrf.mxu3 }
 0x161   : > { %v511_v36 = vadd.f32 %v510_v34, %v487_v33 }
 0x163   : > { %v518_v37 = vadd.f32 %v517_v35, %v511_v36  ;;  %523 = vst [vmem:[#allocation1] sm:$0xff] %v511_v36 }
 0x165   : > { %520 = vst.msk [vmem:[%s1340_s17] sm:$0x1] %vm519_vm4, %v518_v37 }
 0x168   : > { %v490_v42 = vpop.f32.mrf.mxu2  ;;  %v513_v43 = vpop.f32.mrf.mxu3 }
 0x169   : > { %v514_v44 = vadd.f32 %v513_v43, %v490_v42 }
 0x16a   : > { %v525_v38 = vld [vmem:[#allocation1 + $0x1] ss:$9 sm:$0xff] }
 0x16b   : > { %526 = vrot.lane.b32.xlu0 %v525_v38, %s1159_s29  ;;  %533 = vst [vmem:[#allocation1] sm:$0xff] %v511_v36  ;;  %s1040_s29 = scalar_lea.hbm %s1470_s5, 32 }
 0x172   : > { %v535_v39 = vld [vmem:[#allocation1 + $0x2] ss:$9 sm:$0xff] }
 0x173   : > { %536 = vrot.lane.b32.xlu0 %v535_v39, %s1455_s30  ;;  %543 = vst [vmem:[#allocation1] sm:$0xff] %v511_v36  ;;  %s643_s30 = sshll.u32 %s1335_s8, 4  ;;  %s644_s30 = int_to_ptr.vmem [resolvable:$true] %s643_s30 }
 0x17a   : > { %v545_v40 = vld [vmem:[#allocation1 + $0x3] ss:$9 sm:$0xff] }
 0x17b   : > { %546 = vrot.lane.b32.xlu1 %v545_v40, %s1161_s13  ;;  %553 = vst [vmem:[#allocation1] sm:$0xff] %v511_v36 }
 0x182   : > { %v555_v41 = vld [vmem:[#allocation1 + $0x4] ss:$9 sm:$0xff] }
 0x183   : > { %556 = vrot.lane.b32.xlu1 %v555_v41, %s1454_s14  ;;  %563 = vst [vmem:[#allocation1] sm:$0xff] %v511_v36  ;;  %s642_s14 = scalar_lea.hbm %s1470_s5, %s833_s26 }
 0x18a   : > { %v565_v45 = vld [vmem:[#allocation1 + $0x5] ss:$9 sm:$0xff] }
 0x18b   : > { %566 = vrot.lane.b32.xlu2 %v565_v45, %s1163_s15  ;;  %573 = vst [vmem:[#allocation1] sm:$0xff] %v511_v36  ;;  %594 = vrot.lane.b32.xlu1 %v514_v44, %s1164_s10  ;;  %s645_s15 = sshll.u32 %s642_s14, 4  ;;  %s1356_s10 = scalar_lea.sflag [#allocation10], %s609_s11  ;;  %s646_s15 = int_to_ptr.hbm [resolvable:$true] %s645_s15 }
 0x192   : > { %v575_v46 = vld [vmem:[#allocation1 + $0x6] ss:$9 sm:$0xff] }
 0x193   : > { %576 = vrot.lane.b32.xlu2 %v575_v46, %s1165_s16  ;;  %583 = vst [vmem:[#allocation1] sm:$0xff] %v511_v36  ;;  %s1034_s16 = sshra.s32 %s646_s15, 4  ;;  %s1035_s16 = int_to_ptr.hbm [resolvable:$true] %s1034_s16 }
 0x194   : > { %s1036_s0 = scalar_lea.hbm %s1035_s16, 16  ;;  %p1041_p11 = scmp.lt.s32.totalorder %s1035_s16, %s1470_s5 }
 0x195   : > { %p1037_p1 = scmp.ne.s32.totalorder %s1035_s16, %s1036_s0  ;;  %p1042_p9 = scmp.lt.s32.totalorder %s1040_s29, %s1036_s0 }
 0x197   : > { %p1038_p4 = pnand %p1037_p1, %p1278_p5  ;;  %p1043_p2 = por %p1042_p9, %p1041_p11 }
 0x199   : > { %p1039_p8 = pneg %p1038_p4 }
 0x19a   : > { %v585_v47 = vld [vmem:[#allocation1 + $0x7] ss:$9 sm:$0xff] }
 0x19b   : > { %586 = vrot.lane.b32.xlu0 %v585_v47, %s1166_s18  ;;  %p1044_p10 = pnand %p1043_p2, %p1039_p8 }
 0x19d   : > { %1047 = shalt.err (!%p1044_p10)
}
 0x19e   : > { %s1167_s14 = smov 128   ;;  %s1471_s11 = smov 8  }
 0x19f   : > { %845 = dma.vmem_to_hbm [thread:$0]  (%p1278_p5), %s644_s30, 256, %s646_s15, %s1356_s10, %s1167_s14, %s1167_s14, %s1471_s11  }
 0x1a0   : > { %s832_s13 = sshll.u32 %s1225_s25, 5  ;;  %s605_s0 = scalar_lea.sflag [#allocation4], %s1308_s12 }
 0x1a1   : > { %s625_s1 = scalar_lea.hbm %s1448_s4, %s832_s13  ;;  %s1068_s5 = scalar_lea.hbm %s1448_s4, 64 }
 0x1a2   : > { %s628_s26 = sshll.u32 %s625_s1, 4  ;;  %s629_s26 = int_to_ptr.hbm [resolvable:$true] %s628_s26 }
 0x1a3   : > { %s1062_s16 = sshra.s32 %s629_s26, 4  ;;  %s1063_s16 = int_to_ptr.hbm [resolvable:$true] %s1062_s16 }
 0x1a4   : > { %s1064_s29 = scalar_lea.hbm %s1063_s16, 32  ;;  %p1069_p3 = scmp.lt.s32.totalorder %s1063_s16, %s1448_s4 }
 0x1a5   : > { %p1065_p12 = scmp.ne.s32.totalorder %s1063_s16, %s1064_s29  ;;  %p1070_p7 = scmp.lt.s32.totalorder %s1068_s5, %s1064_s29 }
 0x1a7   : > { %p1066_p13 = pnand %p1065_p12, %p1278_p5  ;;  %p1071_p1 = por %p1070_p7, %p1069_p3 }
 0x1a9   : > { %p1067_p0 = pneg %p1066_p13 }
 0x1ab   : > { %p1072_p4 = pnand %p1071_p1, %p1067_p0 }
 0x1ad   : > { %1075 = shalt.err (!%p1072_p4)
}
 0x1ae   : > { %s1168_s1 = smov 256   ;;  %s1472_s12 = smov 16   ;;  %vm530_vm5 = vcmask 155680   ;;  %v521_v49 = vld [vmem:[%s1340_s17] sm:$0x1]  ;;  %vm540_vm6 = vcmask 188480  }
 0x1af   : > { %844 = dma.vmem_to_hbm [thread:$0]  (%p1278_p5), %s1354_s19, 512, %s629_s26, %s605_s0, %s1168_s1, %s1168_s1, %s1472_s12   ;;  %vm550_vm7 = vcmask 221280   ;;  %vm560_vm8 = vcmask 254080   ;;  %vm570_vm9 = vcmask 286880   ;;  %vm580_vm10 = vcmask 319680  }
 0x1b0   : > { %vm590_vm11 = vcmask 352480   ;;  %vm598_vm12 = vcmask 385280   ;;  %s657_s19 = scalar_lea.hbm %s1450_s6, %s1225_s25  ;;  %v601_v8 = vld [vmem:[%s1447_s3] sm:$0x1]  ;;  %s659_s13 = sshll.u32 %s1340_s17, 4  ;;  %s660_s13 = int_to_ptr.vmem [resolvable:$true] %s659_s13 }
 0x1b1   : > { %s661_s27 = sshll.u32 %s657_s19, 4  ;;  %s1096_s16 = scalar_lea.hbm %s1450_s6, 2  ;;  %s662_s27 = int_to_ptr.hbm [resolvable:$true] %s661_s27 }
 0x1b2   : > { %s1090_s18 = sshra.s32 %s662_s27, 4  ;;  %s1091_s18 = int_to_ptr.hbm [resolvable:$true] %s1090_s18 }
 0x1b3   : > { %s1092_s26 = scalar_lea.hbm %s1091_s18, 1  ;;  %p1097_p2 = scmp.lt.s32.totalorder %s1091_s18, %s1450_s6 }
 0x1b4   : > { %p1093_p8 = scmp.ne.s32.totalorder %s1091_s18, %s1092_s26  ;;  %p1098_p10 = scmp.lt.s32.totalorder %s1096_s16, %s1092_s26 }
 0x1b6   : > { %p1094_p11 = pnand %p1093_p8, %p1278_p5  ;;  %p1099_p12 = por %p1098_p10, %p1097_p2 }
 0x1b8   : > { %p1095_p9 = pneg %p1094_p11 }
 0x1ba   : > { %p1100_p13 = pnand %p1099_p12, %p1095_p9 }
 0x1dd   : > { %v527_v48 = vpop.permute.xlu0 %526 }
 0x1de   : > { %v529_v50 = vadd.f32 %v527_v48, %v521_v49 }
 0x1e0   : > { %531 = vst.msk [vmem:[%s1340_s17] sm:$0x1] %vm530_vm5, %v529_v50 }
 0x1e5   : > { %v537_v51 = vpop.permute.xlu0 %536  ;;  %v567_v60 = vpop.permute.xlu2 %566 }
 0x1e7   : > { %v532_v52 = vld [vmem:[%s1340_s17] sm:$0x1] }
 0x1e8   : > { %v539_v53 = vadd.f32 %v537_v51, %v532_v52 }
 0x1ea   : > { %541 = vst.msk [vmem:[%s1340_s17] sm:$0x1] %vm540_vm6, %v539_v53 }
 0x1ed   : > { %v547_v54 = vpop.permute.xlu1 %546  ;;  %v577_v63 = vpop.permute.xlu2 %576 }
 0x1f1   : > { %v542_v55 = vld [vmem:[%s1340_s17] sm:$0x1] }
 0x1f2   : > { %v549_v56 = vadd.f32 %v547_v54, %v542_v55 }
 0x1f4   : > { %551 = vst.msk [vmem:[%s1340_s17] sm:$0x1] %vm550_vm7, %v549_v56 }
 0x1f5   : > { %v557_v57 = vpop.permute.xlu1 %556 }
 0x1fb   : > { %v552_v58 = vld [vmem:[%s1340_s17] sm:$0x1] }
 0x1fc   : > { %v559_v59 = vadd.f32 %v557_v57, %v552_v58 }
 0x1fd   : > { %v595_v5 = vpop.permute.xlu1 %594 }
 0x1fe   : > { %561 = vst.msk [vmem:[%s1340_s17] sm:$0x1] %vm560_vm8, %v559_v59 }
 0x205   : > { %v562_v61 = vld [vmem:[%s1340_s17] sm:$0x1] }
 0x206   : > { %v569_v62 = vadd.f32 %v567_v60, %v562_v61 }
 0x208   : > { %571 = vst.msk [vmem:[%s1340_s17] sm:$0x1] %vm570_vm9, %v569_v62 }
 0x20d   : > { %v587_v2 = vpop.permute.xlu0 %586 }
 0x20f   : > { %v572_v0 = vld [vmem:[%s1340_s17] sm:$0x1] }
 0x210   : > { %v579_v1 = vadd.f32 %v577_v63, %v572_v0 }
 0x212   : > { %581 = vst.msk [vmem:[%s1340_s17] sm:$0x1] %vm580_vm10, %v579_v1 }
 0x219   : > { %v582_v3 = vld [vmem:[%s1340_s17] sm:$0x1] }
 0x21a   : > { %v589_v4 = vadd.f32 %v587_v2, %v582_v3 }
 0x21c   : > { %591 = vst.msk [vmem:[%s1340_s17] sm:$0x1] %vm590_vm11, %v589_v4 }
 0x223   : > { %v592_v6 = vld [vmem:[%s1340_s17] sm:$0x1] }
 0x224   : > { %v597_v7 = vadd.f32 %v595_v5, %v592_v6 }
 0x226   : > { %599 = vst.msk [vmem:[%s1340_s17] sm:$0x1] %vm598_vm12, %v597_v7 }
 0x22d   : > { %v600_v9 = vld [vmem:[%s1340_s17] sm:$0x1] }
 0x22e   : > { %v602_v10 = vmul.f32 %v601_v8, %v600_v9 }
 0x230   : > { %603 = vst [vmem:[%s1340_s17] sm:$0x1] %v602_v10 }
 0x231   : > { %1103 = shalt.err (!%p1100_p13)
}
 0x232   : > { %846 = dma.vmem_to_hbm [thread:$0]  (%p1278_p5), %s660_s13, 16, %s662_s27, %s1356_s10  }
 0x233 PF: > { %s673_s17 = sand.u32 1, %s1138_s21   ;;  %p1473_p0 = scmp.ge.s32.totalorder %s1150_s24, 2 }
 0x234   : > { %s674_s30 = scalar_lea.sflag [#allocation4], %s673_s17 }
 0x235   : > { %p862_p3 = pnand %p1473_p0, %p1241_p6 }
 0x237   : > { %p863_p7 = pneg %p862_p3 }
 0x239   : > { %1129 = dma.done.wait (%p863_p7), %s674_s30, 512  }
 0x23a   : > { %1131 = vsyncadd (%p863_p7), %s674_s30, 4294966784  ;;  %s1474_s15 = sadd.s32 4294967294, %s1150_s24  }
 0x23b   : > { %s683_s1 = sand.u32 1, %s1474_s15  }
 0x23c   : > { %s684_s12 = scalar_lea.sflag [#allocation10], %s683_s1 }
 0x23d   : > { %1133 = dma.done.wait (%p863_p7), %s684_s12, 272  }
 0x23e   : > { %1135 = vsyncadd (%p863_p7), %s684_s12, 4294967024  ;;  %p24_p5 = scmp.ge.s32.totalorder %s1265_s20, 4   ;;  %s1475_s21 = smov %s1142_s22 }
 0x23f   : > { %s1476_s22 = smov %s1146_s23  ;;  %s1477_s23 = smov %s1274_s7 }
 0x240   : > { %s1478_s24 = smov %s1265_s20  ;;  %26 = sbr.rel (!%p24_p5) target bundleno = 13 (0xd), region = 128 }
 0x245   :  { %699 = vsyncpa [#allocation3], 1 }
 0x246   :  { %701 = vsyncpa [#allocation3 + $0x1], 1 }
 0x247   :  { %702 = vsyncpa [#allocation6], 1 }
 0x248   :  { %703 = vsyncpa [#allocation4], 1 }
 0x249   :  { %705 = vsyncpa [#allocation4 + $0x1], 1 }
 0x24a   :  { %706 = vsyncpa [#allocation10], 1 }
 0x24b   :  { %708 = vsyncpa [#allocation10 + $0x1], 1 }

</bundles_post_ra>
